<compile_context>
chip_gen: v6e
topology: v6e:2x2x1
jax: 0.10.0
libtpu: 0.0.40
codegen_flags: <defaults>
</compile_context>

<pallas_src>
import functools
import math

import jax
import jax.numpy as jnp
from jax.experimental import pallas as pl
from jax.experimental.pallas import tpu as pltpu

DEFAULT_TEMPERATURE = 0.07
_NEG = -1e30         # finite "-inf": keeps max/exp arithmetic NaN-free on padding
_EXP_CLAMP = 80.0    # overflow guard for the factored column exponentials


def _round_up(x, m):
    return ((x + m - 1) // m) * m


def _vmem_capacity_bytes():
    # Budget-aware residency decision; fall back to the smallest per-core VMEM
    # of any supported generation (v7x: 64 MiB) if the query is unavailable.
    try:
        return int(pltpu.get_tpu_info().vmem_capacity_bytes)
    except Exception:
        return 64 * 1024 * 1024


def _clip_loss_kernel(img_ref, txt_ref,
                      row_part_ref, col_m_ref, col_s_ref,
                      row_m_ref, row_s_ref, row_d_ref,
                      *, scale, tm, tn, n_valid, padded):
    i = pl.program_id(0)            # row tile of logits_per_image (parallel)
    j = pl.program_id(1)            # col tile (innermost, arbitrary)
    nj = pl.num_programs(1)

    img = img_ref[...]                                     # (tm, Dp)
    txt = txt_ref[...]                                     # (tn, Dp)

    # logits block = scale * img @ txt.T : contract the feature dim on both
    # operands (no transpose materialised), bf16-in / f32-accumulate.
    lb = scale * jax.lax.dot_general(
        img, txt, dimension_numbers=(((1,), (1,)), ((), ())),
        preferred_element_type=jnp.float32)                # (tm, tn) f32

    def _iotas():
        r = i * tm + jax.lax.broadcasted_iota(jnp.int32, (tm, tn), 0)
        c = j * tn + jax.lax.broadcasted_iota(jnp.int32, (tm, tn), 1)
        return r, c

    if padded:   # static Python bool: the aligned path has zero iotas / masks
        r_g, c_g = _iotas()
        lb = jnp.where((r_g < n_valid) & (c_g < n_valid), lb, _NEG)

    # ---- per-row-tile state (persists across the j sweep only) ----
    @pl.when(j == 0)
    def _init():
        row_m_ref[...] = jnp.full_like(row_m_ref, _NEG)
        row_s_ref[...] = jnp.zeros_like(row_s_ref)
        row_d_ref[...] = jnp.zeros_like(row_d_ref)

    # ---- diagonal, extracted from the MXU logits block (iota-equality mask);
    # only on tiles whose column range overlaps the row range ----
    @pl.when((i * tm < (j + 1) * tn) & (j * tn < (i + 1) * tm))
    def _diag():
        r_g, c_g = _iotas()
        d = jnp.sum(jnp.where(r_g == c_g, lb, 0.0), axis=-1, keepdims=True)
        row_d_ref[...] = row_d_ref[...] + d

    # ---- row LSE: online (max, sumexp); the ONE full-tile exp per step ----
    r_m = row_m_ref[...]                                   # (tm, 1)
    r_s = row_s_ref[...]
    r_m_new = jnp.maximum(r_m, jnp.max(lb, axis=-1, keepdims=True))
    e = jnp.exp(lb - r_m_new)                              # (tm, tn)
    r_s_new = r_s * jnp.exp(r_m - r_m_new) + jnp.sum(e, axis=-1, keepdims=True)
    row_m_ref[...] = r_m_new
    row_s_ref[...] = r_s_new

    # ---- per-(i, j) column partials (relative to this tile's per-column max),
    # reusing `e` via clamped factored exponentials: only tm + tn extra exps.
    #   sum_r exp(lb - cm) = (sum_r e * exp(r_m_new - g)) * exp(g - cm)
    # with g = tile max, so e * exp(r_m_new - g) = exp(lb - g) <= 1 (no
    # overflow); exp(g - cm) is clamped (only matters for extreme, unnormalised
    # embeddings - normalised CLIP features never hit the clamp). ----
    cm = jnp.max(lb, axis=0, keepdims=True)                # (1, tn)
    g = jnp.max(r_m_new, keepdims=True)                    # (1, 1)
    w_r = jnp.exp(r_m_new - g)                             # (tm, 1), <= 1
    w_c = jnp.exp(jnp.minimum(g - cm, _EXP_CLAMP))         # (1, tn)
    c_s = jnp.sum(e * w_r, axis=0, keepdims=True) * w_c    # (1, tn)
    col_m_ref[...] = cm[None]
    col_s_ref[...] = c_s[None]

    # ---- finalize this row tile: per-row contribution = row_lse - 2*diag ----
    @pl.when(j == nj - 1)
    def _finish_rows():
        row_lse = r_m_new + jnp.log(r_s_new)               # (tm, 1)
        contrib = row_lse - 2.0 * row_d_ref[...]
        if padded:
            rr = i * tm + jax.lax.broadcasted_iota(jnp.int32, (tm, 1), 0)
            contrib = jnp.where(rr < n_valid, contrib, 0.0)
        row_part_ref[...] = contrib[None]                  # (1, tm, 1)


def clip_loss(image_features, text_features, *,
              temperature=DEFAULT_TEMPERATURE, block=None):
    """Pallas implementation of ClipLoss.forward. Returns a scalar float32."""
    if image_features.ndim != 2 or image_features.shape != text_features.shape:
        raise ValueError("expected matching (N, D) feature matrices")
    n, d = image_features.shape
    scale = math.log(1.0 / temperature)

    img, txt = image_features, text_features
    # Feed the MXU bf16-in / f32-accumulate: native f32 matmul runs multi-pass
    # on v6e/v7x and doubles DMA bytes.  The diagonal is taken from the same
    # MXU logits, so the whole loss stays on one precision path.
    if img.dtype in (jnp.float32, jnp.float64):
        img = img.astype(jnp.bfloat16)
    if txt.dtype in (jnp.float32, jnp.float64):
        txt = txt.astype(jnp.bfloat16)
    itemsize = jnp.dtype(img.dtype).itemsize
    min_sub = {4: 8, 2: 16, 1: 32}.get(itemsize, 8)   # dtype-aware sublane tile

    d_pad = _round_up(d, 128)
    vmem_cap = _vmem_capacity_bytes()
    vmem_budget = (vmem_cap * 7) // 10                # leave compiler headroom

    # Row tile: 256-multiples feed every generation's MXU (don't drop to 128 on
    # v5e - that halves the streamed arithmetic intensity).
    req = 256 if block is None else int(block)
    tm = min(_round_up(req, min_sub), _round_up(n, min_sub))
    n_pad = _round_up(n, tm)

    def _resident_cost(tm_, tn_):
        return (2 * n_pad * d_pad * itemsize     # resident txt (double-buffered)
                + 2 * tm_ * d_pad * itemsize     # img tile (double-buffered)
                + 3 * tm_ * tn_ * 4              # f32 logits / exp intermediates
                + 4 * (tn_ + tm_) * 4            # output blocks
                + 3 * tm_ * 4)                   # row scratch

    txt_resident = _resident_cost(tm, n_pad) <= vmem_budget
    if txt_resident:
        tn = n_pad          # collapse the j sweep: grid = (ni, 1), txt DMA'd once
    else:
        # Streamed txt is re-fetched once per row tile: raise tm so the
        # arithmetic intensity (~2*tm/itemsize flop/B) clears the HBM roofline.
        if block is None:
            tm = min(512, _round_up(n, min_sub))
            n_pad = _round_up(n, tm)
        tn = tm

    ni = n_pad // tm
    nj = n_pad // tn
    padded = n_pad != n

    if (n_pad, d_pad) != (n, d):
        img = jnp.pad(img, ((0, n_pad - n), (0, d_pad - d)))
        txt = jnp.pad(txt, ((0, n_pad - n), (0, d_pad - d)))

    if txt_resident:
        est = _resident_cost(tm, tn)
    else:
        est = (2 * tn * d_pad * itemsize + 2 * tm * d_pad * itemsize
               + 3 * tm * tn * 4 + 4 * (tn + tm) * 4 + 3 * tm * 4)
    vmem_limit = int(min(vmem_cap * 15 // 16, max(est + (16 << 20), 32 << 20)))

    kernel = functools.partial(_clip_loss_kernel, scale=scale, tm=tm, tn=tn,
                               n_valid=n, padded=padded)

    txt_bytes = n_pad * d_pad * itemsize * (1 if txt_resident else ni)
    cost = pl.CostEstimate(
        flops=int(2 * n_pad * n_pad * d_pad + 8 * n_pad * n_pad),
        transcendentals=int(n_pad * n_pad + 2 * n_pad * (ni + nj)),
        bytes_accessed=int(n_pad * d_pad * itemsize + txt_bytes
                           + 4 * ni * (tm + 2 * n_pad)),
    )

    row_part, col_m, col_s = pl.pallas_call(
        kernel,
        out_shape=(jax.ShapeDtypeStruct((ni, tm, 1), jnp.float32),
                   jax.ShapeDtypeStruct((ni, 1, n_pad), jnp.float32),
                   jax.ShapeDtypeStruct((ni, 1, n_pad), jnp.float32)),
        grid=(ni, nj),
        in_specs=[pl.BlockSpec((tm, d_pad), lambda i, j: (i, 0)),
                  pl.BlockSpec((tn, d_pad), lambda i, j: (j, 0))],
        out_specs=(pl.BlockSpec((1, tm, 1), lambda i, j: (i, 0, 0)),
                   pl.BlockSpec((1, 1, tn), lambda i, j: (i, 0, j)),
                   pl.BlockSpec((1, 1, tn), lambda i, j: (i, 0, j))),
        scratch_shapes=[pltpu.VMEM((tm, 1), jnp.float32),   # running row max
                        pltpu.VMEM((tm, 1), jnp.float32),   # running row sumexp
                        pltpu.VMEM((tm, 1), jnp.float32)],  # per-row diag accum
        compiler_params=pltpu.CompilerParams(
            dimension_semantics=("parallel", "arbitrary"),
            vmem_limit_bytes=vmem_limit),
        cost_estimate=cost,
    )(img, txt)

    # Tiny epilogue: merge per-row-tile column (max, sumexp) partials into the
    # column LSE and fold in the per-row contributions.  O(ni * N) work,
    # negligible vs N^2 * D, and it keeps the i axis race-free / parallel.
    col_m = col_m[:, 0, :]
    col_s = col_s[:, 0, :]
    m = jnp.max(col_m, axis=0)
    s = jnp.sum(col_s * jnp.exp(col_m - m[None, :]), axis=0)
    col_lse = m + jnp.log(s)
    if padded:
        col_lse = jnp.where(jnp.arange(n_pad) < n, col_lse, 0.0)
    total = jnp.sum(row_part) + jnp.sum(col_lse)
    return total / (2.0 * n)


def _reference_clip_loss(image_features, text_features,
                         temperature=DEFAULT_TEMPERATURE):
    """Pure-JAX reference, mirroring the PyTorch module op-for-op."""
    img = image_features.astype(jnp.float32)
    txt = text_features.astype(jnp.float32)
    n = img.shape[0]
    scale = math.log(1.0 / temperature)
    logits_i = scale * img @ txt.T
    logits_t = scale * txt @ img.T
    lsm_i = jax.nn.log_softmax(logits_i, axis=-1)
    lsm_t = jax.nn.log_softmax(logits_t, axis=-1)
    loss_a = -jnp.sum(jnp.diag(lsm_i)) / n
    loss_b = -jnp.sum(jnp.diag(lsm_t)) / n
    return (loss_a + loss_b) / 2.0


if __name__ == "__main__":
    key = jax.random.PRNGKey(0)
    k1, k2 = jax.random.split(key)

    # Small shapes consistent with the module: a batch of paired embeddings.
    N, D = 8, 32
    image_features = jax.random.normal(k1, (N, D), dtype=jnp.float32)
    text_features = jax.random.normal(k2, (N, D), dtype=jnp.float32)

    loss = clip_loss(image_features, text_features)
    jax.block_until_ready(loss)
    ref = _reference_clip_loss(image_features, text_features)
    # Tolerance allows for the bf16-in / f32-accumulate MXU path vs the
    # exact-f32 XLA reference; structural errors would be orders larger.
    assert jnp.allclose(loss, ref, rtol=2e-2, atol=2e-2), (loss, ref)

    # Also exercise the multi-row-tile + padded path (ragged N, D -> 128).
    k3, k4 = jax.random.split(k2)
    N2, D2 = 20, 48
    img2 = jax.random.normal(k3, (N2, D2), dtype=jnp.float32)
    txt2 = jax.random.normal(k4, (N2, D2), dtype=jnp.float32)
    loss2 = clip_loss(img2, txt2, block=8)
    jax.block_until_ready(loss2)
    ref2 = _reference_clip_loss(img2, txt2)
    assert jnp.allclose(loss2, ref2, rtol=2e-2, atol=2e-2), (loss2, ref2)

    print("KERNEL_OK")
</pallas_src>

<mosaic_0001>
module attributes {stable_mosaic.version = 11 : i64} {
  func.func @_clip_loss_kernel(%arg0: i32, %arg1: i32, %arg2: memref<16x128xbf16, #tpu.memory_space<vmem>>, %arg3: memref<16x128xbf16, #tpu.memory_space<vmem>>, %arg4: memref<1x16x1xf32, #tpu.memory_space<vmem>>, %arg5: memref<1x1x16xf32, #tpu.memory_space<vmem>>, %arg6: memref<1x1x16xf32, #tpu.memory_space<vmem>>, %arg7: memref<16x1xf32, #tpu.memory_space<vmem>>, %arg8: memref<16x1xf32, #tpu.memory_space<vmem>>, %arg9: memref<16x1xf32, #tpu.memory_space<vmem>>) attributes {dimension_semantics = [#tpu.dimension_semantics<parallel>, #tpu.dimension_semantics<arbitrary>], iteration_bounds = array<i64: 1, 1>, scalar_prefetch = 0 : i64, scratch_operands = 3 : i64, tpu.core_type = #tpu.core_type<tc>, window_params = [{transform_indices = @transform_0, window_bounds = array<i64: 16, 128>}, {transform_indices = @transform_1, window_bounds = array<i64: 16, 128>}, {transform_indices = @transform_2, window_bounds = array<i64: 1, 16, 1>}, {transform_indices = @transform_3, window_bounds = array<i64: 1, 1, 16>}, {transform_indices = @transform_4, window_bounds = array<i64: 1, 1, 16>}]} {
    %c0 = arith.constant 0 : index
    %c0_0 = arith.constant 0 : index
    %0 = vector.load %arg2[%c0, %c0_0] : memref<16x128xbf16, #tpu.memory_space<vmem>>, vector<16x128xbf16>
    %c0_1 = arith.constant 0 : index
    %c0_2 = arith.constant 0 : index
    %1 = vector.load %arg3[%c0_1, %c0_2] : memref<16x128xbf16, #tpu.memory_space<vmem>>, vector<16x128xbf16>
    %cst = arith.constant dense<0.000000e+00> : vector<16x16xf32>
    %2 = tpu.matmul %0, %1, %cst {dimension_numbers = #tpu.dot_dimension_numbers<[1], [1], [0], [0], [0, 0, 1, 0], [], []>} : vector<16x128xbf16>, vector<16x128xbf16>, vector<16x16xf32> -> vector<16x16xf32>
    %cst_3 = arith.constant 2.659260e+00 : f32
    %3 = vector.broadcast %cst_3 : f32 to vector<16x16xf32>
    %4 = arith.mulf %3, %2 : vector<16x16xf32>
    %c16_i32 = arith.constant 16 : i32
    %5 = arith.muli %arg0, %c16_i32 : i32
    %6 = tpu.iota {dimensions = array<i32: 0>} : vector<16x16xi32>
    %7 = vector.broadcast %5 : i32 to vector<16x16xi32>
    %8 = arith.addi %7, %6 : vector<16x16xi32>
    %c16_i32_4 = arith.constant 16 : i32
    %9 = arith.muli %arg1, %c16_i32_4 : i32
    %10 = tpu.iota {dimensions = array<i32: 1>} : vector<16x16xi32>
    %11 = vector.broadcast %9 : i32 to vector<16x16xi32>
    %12 = arith.addi %11, %10 : vector<16x16xi32>
    %c8_i32 = arith.constant 8 : i32
    %13 = vector.broadcast %c8_i32 : i32 to vector<16x16xi32>
    %14 = arith.cmpi slt, %8, %13 : vector<16x16xi32>
    %c8_i32_5 = arith.constant 8 : i32
    %15 = vector.broadcast %c8_i32_5 : i32 to vector<16x16xi32>
    %16 = arith.cmpi slt, %12, %15 : vector<16x16xi32>
    %17 = arith.andi %14, %16 : vector<16x16xi1>
    %cst_6 = arith.constant -1.000000e+30 : f32
    %18 = vector.broadcast %cst_6 : f32 to vector<16x16xf32>
    %19 = arith.select %17, %4, %18 : vector<16x16xi1>, vector<16x16xf32>
    %c0_i32 = arith.constant 0 : i32
    %20 = arith.cmpi eq, %arg1, %c0_i32 : i32
    %21 = arith.extui %20 : i1 to i32
    %c0_i32_7 = arith.constant 0 : i32
    %22 = arith.cmpi ne, %21, %c0_i32_7 : i32
    scf.if %22 {
      %cst_36 = arith.constant -1.000000e+30 : f32
      %77 = vector.broadcast %cst_36 : f32 to vector<16x1xf32>
      %c0_37 = arith.constant 0 : index
      %c0_38 = arith.constant 0 : index
      %78 = vector.load %arg7[%c0_37, %c0_38] : memref<16x1xf32, #tpu.memory_space<vmem>>, vector<16x1xf32>
      tpu.vector_store %arg7[%c0_37, %c0_38], %77 {strides = array<i32>} : memref<16x1xf32, #tpu.memory_space<vmem>>, vector<16x1xf32>,
      %cst_39 = arith.constant 0.000000e+00 : f32
      %79 = vector.broadcast %cst_39 : f32 to vector<16x1xf32>
      %c0_40 = arith.constant 0 : index
      %c0_41 = arith.constant 0 : index
      %80 = vector.load %arg8[%c0_40, %c0_41] : memref<16x1xf32, #tpu.memory_space<vmem>>, vector<16x1xf32>
      tpu.vector_store %arg8[%c0_40, %c0_41], %79 {strides = array<i32>} : memref<16x1xf32, #tpu.memory_space<vmem>>, vector<16x1xf32>,
      %cst_42 = arith.constant 0.000000e+00 : f32
      %81 = vector.broadcast %cst_42 : f32 to vector<16x1xf32>
      %c0_43 = arith.constant 0 : index
      %c0_44 = arith.constant 0 : index
      %82 = vector.load %arg9[%c0_43, %c0_44] : memref<16x1xf32, #tpu.memory_space<vmem>>, vector<16x1xf32>
      tpu.vector_store %arg9[%c0_43, %c0_44], %81 {strides = array<i32>} : memref<16x1xf32, #tpu.memory_space<vmem>>, vector<16x1xf32>,
    } else {
    }
    %c16_i32_8 = arith.constant 16 : i32
    %23 = arith.muli %arg0, %c16_i32_8 : i32
    %c1_i32 = arith.constant 1 : i32
    %24 = arith.addi %arg1, %c1_i32 : i32
    %c16_i32_9 = arith.constant 16 : i32
    %25 = arith.muli %24, %c16_i32_9 : i32
    %26 = arith.cmpi slt, %23, %25 : i32
    %c16_i32_10 = arith.constant 16 : i32
    %27 = arith.muli %arg1, %c16_i32_10 : i32
    %c1_i32_11 = arith.constant 1 : i32
    %28 = arith.addi %arg0, %c1_i32_11 : i32
    %c16_i32_12 = arith.constant 16 : i32
    %29 = arith.muli %28, %c16_i32_12 : i32
    %30 = arith.cmpi slt, %27, %29 : i32
    %31 = arith.andi %26, %30 : i1
    %32 = arith.extui %31 : i1 to i32
    %c0_i32_13 = arith.constant 0 : i32
    %33 = arith.cmpi ne, %32, %c0_i32_13 : i32
    scf.if %33 {
      %c16_i32_36 = arith.constant 16 : i32
      %77 = arith.muli %arg0, %c16_i32_36 : i32
      %78 = tpu.iota {dimensions = array<i32: 0>} : vector<16x16xi32>
      %79 = vector.broadcast %77 : i32 to vector<16x16xi32>
      %80 = arith.addi %79, %78 : vector<16x16xi32>
      %c16_i32_37 = arith.constant 16 : i32
      %81 = arith.muli %arg1, %c16_i32_37 : i32
      %82 = tpu.iota {dimensions = array<i32: 1>} : vector<16x16xi32>
      %83 = vector.broadcast %81 : i32 to vector<16x16xi32>
      %84 = arith.addi %83, %82 : vector<16x16xi32>
      %85 = arith.cmpi eq, %80, %84 : vector<16x16xi32>
      %cst_38 = arith.constant 0.000000e+00 : f32
      %86 = vector.broadcast %cst_38 : f32 to vector<16x16xf32>
      %87 = arith.select %85, %19, %86 : vector<16x16xi1>, vector<16x16xf32>
      %cst_39 = arith.constant dense<0.000000e+00> : vector<16xf32>
      %88 = vector.multi_reduction <add>, %87, %cst_39 [1] : vector<16x16xf32> to vector<16xf32>
      %89 = vector.shape_cast %88 : vector<16xf32> to vector<16x1xf32>
      %c0_40 = arith.constant 0 : index
      %c0_41 = arith.constant 0 : index
      %90 = vector.load %arg9[%c0_40, %c0_41] : memref<16x1xf32, #tpu.memory_space<vmem>>, vector<16x1xf32>
      %91 = arith.addf %90, %89 : vector<16x1xf32>
      %c0_42 = arith.constant 0 : index
      %c0_43 = arith.constant 0 : index
      %92 = vector.load %arg9[%c0_42, %c0_43] : memref<16x1xf32, #tpu.memory_space<vmem>>, vector<16x1xf32>
      tpu.vector_store %arg9[%c0_42, %c0_43], %91 {strides = array<i32>} : memref<16x1xf32, #tpu.memory_space<vmem>>, vector<16x1xf32>,
    } else {
    }
    %c0_14 = arith.constant 0 : index
    %c0_15 = arith.constant 0 : index
    %34 = vector.load %arg7[%c0_14, %c0_15] : memref<16x1xf32, #tpu.memory_space<vmem>>, vector<16x1xf32>
    %c0_16 = arith.constant 0 : index
    %c0_17 = arith.constant 0 : index
    %35 = vector.load %arg8[%c0_16, %c0_17] : memref<16x1xf32, #tpu.memory_space<vmem>>, vector<16x1xf32>
    %cst_18 = arith.constant dense<0xFF800000> : vector<16xf32>
    %36 = vector.multi_reduction <maximumf>, %19, %cst_18 [1] : vector<16x16xf32> to vector<16xf32>
    %37 = vector.shape_cast %36 : vector<16xf32> to vector<16x1xf32>
    %38 = arith.maximumf %34, %37 : vector<16x1xf32>
    %39 = vector.broadcast %38 : vector<16x1xf32> to vector<16x16xf32>
    %40 = arith.subf %19, %39 : vector<16x16xf32>
    %41 = math.exp %40 : vector<16x16xf32>
    %42 = arith.subf %34, %38 : vector<16x1xf32>
    %43 = math.exp %42 : vector<16x1xf32>
    %44 = arith.mulf %35, %43 : vector<16x1xf32>
    %cst_19 = arith.constant dense<0.000000e+00> : vector<16xf32>
    %45 = vector.multi_reduction <add>, %41, %cst_19 [1] : vector<16x16xf32> to vector<16xf32>
    %46 = vector.shape_cast %45 : vector<16xf32> to vector<16x1xf32>
    %47 = arith.addf %44, %46 : vector<16x1xf32>
    %c0_20 = arith.constant 0 : index
    %c0_21 = arith.constant 0 : index
    %48 = vector.load %arg7[%c0_20, %c0_21] : memref<16x1xf32, #tpu.memory_space<vmem>>, vector<16x1xf32>
    tpu.vector_store %arg7[%c0_20, %c0_21], %38 {strides = array<i32>} : memref<16x1xf32, #tpu.memory_space<vmem>>, vector<16x1xf32>,
    %c0_22 = arith.constant 0 : index
    %c0_23 = arith.constant 0 : index
    %49 = vector.load %arg8[%c0_22, %c0_23] : memref<16x1xf32, #tpu.memory_space<vmem>>, vector<16x1xf32>
    tpu.vector_store %arg8[%c0_22, %c0_23], %47 {strides = array<i32>} : memref<16x1xf32, #tpu.memory_space<vmem>>, vector<16x1xf32>,
    %cst_24 = arith.constant dense<0xFF800000> : vector<16xf32>
    %50 = vector.multi_reduction <maximumf>, %19, %cst_24 [0] : vector<16x16xf32> to vector<16xf32>
    %51 = vector.shape_cast %50 : vector<16xf32> to vector<1x16xf32>
    %52 = vector.shape_cast %38 : vector<16x1xf32> to vector<1x16x1xf32>
    %cst_25 = arith.constant dense<0xFF800000> : vector<1xf32>
    %53 = vector.multi_reduction <maximumf>, %52, %cst_25 [1, 2] : vector<1x16x1xf32> to vector<1xf32>
    %54 = vector.shape_cast %53 : vector<1xf32> to vector<1x1x1xf32>
    %55 = vector.extract %54[0, 0, 0] : f32 from vector<1x1x1xf32>
    %56 = vector.broadcast %55 : f32 to vector<1x1xf32>
    %57 = vector.broadcast %56 : vector<1x1xf32> to vector<16x1xf32>
    %58 = arith.subf %38, %57 : vector<16x1xf32>
    %59 = math.exp %58 : vector<16x1xf32>
    %60 = vector.broadcast %56 : vector<1x1xf32> to vector<1x16xf32>
    %61 = arith.subf %60, %51 : vector<1x16xf32>
    %cst_26 = arith.constant 8.000000e+01 : f32
    %62 = vector.broadcast %cst_26 : f32 to vector<1x16xf32>
    %63 = arith.minimumf %61, %62 : vector<1x16xf32>
    %64 = math.exp %63 : vector<1x16xf32>
    %65 = vector.broadcast %59 : vector<16x1xf32> to vector<16x16xf32>
    %66 = arith.mulf %41, %65 : vector<16x16xf32>
    %cst_27 = arith.constant dense<0.000000e+00> : vector<16xf32>
    %67 = vector.multi_reduction <add>, %66, %cst_27 [0] : vector<16x16xf32> to vector<16xf32>
    %68 = vector.shape_cast %67 : vector<16xf32> to vector<1x16xf32>
    %69 = arith.mulf %68, %64 : vector<1x16xf32>
    %70 = vector.shape_cast %51 : vector<1x16xf32> to vector<1x1x16xf32>
    %c0_28 = arith.constant 0 : index
    %c0_29 = arith.constant 0 : index
    %c0_30 = arith.constant 0 : index
    %71 = vector.load %arg5[%c0_28, %c0_29, %c0_30] : memref<1x1x16xf32, #tpu.memory_space<vmem>>, vector<1x1x16xf32>
    tpu.vector_store %arg5[%c0_28, %c0_29, %c0_30], %70 {strides = array<i32>} : memref<1x1x16xf32, #tpu.memory_space<vmem>>, vector<1x1x16xf32>,
    %72 = vector.shape_cast %69 : vector<1x16xf32> to vector<1x1x16xf32>
    %c0_31 = arith.constant 0 : index
    %c0_32 = arith.constant 0 : index
    %c0_33 = arith.constant 0 : index
    %73 = vector.load %arg6[%c0_31, %c0_32, %c0_33] : memref<1x1x16xf32, #tpu.memory_space<vmem>>, vector<1x1x16xf32>
    tpu.vector_store %arg6[%c0_31, %c0_32, %c0_33], %72 {strides = array<i32>} : memref<1x1x16xf32, #tpu.memory_space<vmem>>, vector<1x1x16xf32>,
    %c0_i32_34 = arith.constant 0 : i32
    %74 = arith.cmpi eq, %arg1, %c0_i32_34 : i32
    %75 = arith.extui %74 : i1 to i32
    %c0_i32_35 = arith.constant 0 : i32
    %76 = arith.cmpi ne, %75, %c0_i32_35 : i32
    scf.if %76 {
      %77 = math.log %47 : vector<16x1xf32>
      %78 = arith.addf %38, %77 : vector<16x1xf32>
      %c0_36 = arith.constant 0 : index
      %c0_37 = arith.constant 0 : index
      %79 = vector.load %arg9[%c0_36, %c0_37] : memref<16x1xf32, #tpu.memory_space<vmem>>, vector<16x1xf32>
      %cst_38 = arith.constant 2.000000e+00 : f32
      %80 = vector.broadcast %cst_38 : f32 to vector<16x1xf32>
      %81 = arith.mulf %80, %79 : vector<16x1xf32>
      %82 = arith.subf %78, %81 : vector<16x1xf32>
      %c16_i32_39 = arith.constant 16 : i32
      %83 = arith.muli %arg0, %c16_i32_39 : i32
      %84 = tpu.iota {dimensions = array<i32: 0>} : vector<16x1xi32>
      %85 = vector.broadcast %83 : i32 to vector<16x1xi32>
      %86 = arith.addi %85, %84 : vector<16x1xi32>
      %c8_i32_40 = arith.constant 8 : i32
      %87 = vector.broadcast %c8_i32_40 : i32 to vector<16x1xi32>
      %88 = arith.cmpi slt, %86, %87 : vector<16x1xi32>
      %cst_41 = arith.constant 0.000000e+00 : f32
      %89 = vector.broadcast %cst_41 : f32 to vector<16x1xf32>
      %90 = arith.select %88, %82, %89 : vector<16x1xi1>, vector<16x1xf32>
      %91 = vector.shape_cast %90 : vector<16x1xf32> to vector<1x16x1xf32>
      %c0_42 = arith.constant 0 : index
      %c0_43 = arith.constant 0 : index
      %c0_44 = arith.constant 0 : index
      %92 = vector.load %arg4[%c0_42, %c0_43, %c0_44] : memref<1x16x1xf32, #tpu.memory_space<vmem>>, vector<1x16x1xf32>
      tpu.vector_store %arg4[%c0_42, %c0_43, %c0_44], %91 {strides = array<i32>} : memref<1x16x1xf32, #tpu.memory_space<vmem>>, vector<1x16x1xf32>,
    } else {
    }
    return
  }
  func.func @transform_0(%arg0: i32, %arg1: i32) -> (i32, i32) {
    %c0_i32 = arith.constant 0 : i32
    %c0_i32_0 = arith.constant 0 : i32
    return %arg0, %c0_i32 : i32, i32
  }
  func.func @transform_1(%arg0: i32, %arg1: i32) -> (i32, i32) {
    %c0_i32 = arith.constant 0 : i32
    %c0_i32_0 = arith.constant 0 : i32
    return %arg1, %c0_i32 : i32, i32
  }
  func.func @transform_2(%arg0: i32, %arg1: i32) -> (i32, i32, i32) {
    %c0_i32 = arith.constant 0 : i32
    %c0_i32_0 = arith.constant 0 : i32
    %c0_i32_1 = arith.constant 0 : i32
    return %arg0, %c0_i32, %c0_i32_0 : i32, i32, i32
  }
  func.func @transform_3(%arg0: i32, %arg1: i32) -> (i32, i32, i32) {
    %c0_i32 = arith.constant 0 : i32
    %c0_i32_0 = arith.constant 0 : i32
    return %arg0, %c0_i32, %arg1 : i32, i32, i32
  }
  func.func @transform_4(%arg0: i32, %arg1: i32) -> (i32, i32, i32) {
    %c0_i32 = arith.constant 0 : i32
    %c0_i32_0 = arith.constant 0 : i32
    return %arg0, %c0_i32, %arg1 : i32, i32, i32
  }
}

</mosaic_0001>

<bundles_post_ra>
// kernel: tpu_custom_call.1
= control target key start
LH: loop header
LB: loop body
LE: loop exit
PB: predicated region body
PF: predicated region fallthrough
CT: control target
= control target key end

     0   :  { %10 = vsyncpa [#allocation6], 0  ;;  %s568_s0 = inlined_call_operand.hbm [shape: bf16[16,128], index: 0, kind: input, shape index: {}]   ;;  %s569_s1 = inlined_call_operand.hbm [shape: bf16[16,128], index: 1, kind: input, shape index: {}]   ;;  %s570_s2 = inlined_call_operand.vmem [shape: f32[1,16,1], index: 2, kind: output, shape index: {0}]   ;;  %s571_s3 = inlined_call_operand.hbm [shape: f32[1,1,16], index: 3, kind: output, shape index: {1}]   ;;  %s572_s4 = inlined_call_operand.hbm [shape: f32[1,1,16], index: 4, kind: output, shape index: {2}]  }
   0x1   :  { %11 = vsyncpa [#allocation9], 0 }
   0x2   :  { %12 = vsyncpa [#allocation7], 0 }
   0x3   :  { %13 = vsyncpa [#allocation12], 0  ;;  %s451_s15 = smov [#allocation5]  }
   0x4   :  { %s19_s16 = sshll.u32 %s451_s15, 4  ;;  %s20_s16 = int_to_ptr.vmem [resolvable:$true] %s19_s16 }
   0x5   :  { %s371_s17 = scalar_lea.vmem %s20_s16, 128  ;;  %p376_p1 = scmp.lt.s32.totalorder %s20_s16, %s20_s16 }
   0x6   :  { %p372_p0 = scmp.ne.s32.totalorder %s20_s16, %s371_s17  ;;  %p377_p2 = scmp.lt.s32.totalorder %s371_s17, %s371_s17 }
   0x8   :  { %p378_p3 = por %p377_p2, %p376_p1 }
   0xa   :  { %p379_p4 = pnand %p378_p3, %p372_p0 }
   0xc   :  { %382 = shalt.err (!%p379_p4)
}
   0xd   :  { %s452_s18 = smov 64   ;;  %s453_s19 = smov 4  }
   0xe   :  { %25 = dma.hbm_to_vmem [thread:$0]  %s568_s0, 128, %s20_s16, [#allocation6], %s452_s18, %s452_s18, %s453_s19  }
   0xf   :  { %s454_s22 = smov [#allocation8]  }
  0x10   :  { %s31_s23 = sshll.u32 %s454_s22, 4  ;;  %s32_s23 = int_to_ptr.vmem [resolvable:$true] %s31_s23 }
  0x11   :  { %s391_s24 = scalar_lea.vmem %s32_s23, 128  ;;  %p396_p6 = scmp.lt.s32.totalorder %s32_s23, %s32_s23 }
  0x12   :  { %p392_p5 = scmp.ne.s32.totalorder %s32_s23, %s391_s24  ;;  %p397_p7 = scmp.lt.s32.totalorder %s391_s24, %s391_s24 }
  0x14   :  { %p398_p8 = por %p397_p7, %p396_p6 }
  0x16   :  { %p399_p9 = pnand %p398_p8, %p392_p5 }
  0x18   :  { %402 = shalt.err (!%p399_p9)
}
  0x19   :  { %37 = dma.hbm_to_vmem [thread:$0]  %s569_s1, 128, %s32_s23, [#allocation9], %s452_s18, %s452_s18, %s453_s19  }
  0x1a   :  { %443 = dma.done.wait [#allocation6], 128  }
  0x1b   :  { %444 = vsyncadd [#allocation6], 4294967168 }
  0x1c   :  { %445 = dma.done.wait [#allocation9], 128  }
  0x1d   :  { %446 = vsyncadd [#allocation9], 4294967168  ;;  %vm127_vm0 = vcmask 7168   ;;  %v455_v0 = vmov 0.0   ;;  %vm456_vm1 = vmmov 0   ;;  %v345_v1 = vld [vmem:[#allocation8] sm:$0xff]   ;;  %v105_v4 = vlaneseq }
  0x1e   :  { %324 = vmatprep.subr.bf16.mxu0 %v455_v0  ;;  %285 = vst.msk [vmem:[%s570_s2 + $0x8] sm:$0xff] %vm127_vm0, %v455_v0  ;;  %130 = vst.msk [vmem:[#allocation3] sm:$0xff] %vm127_vm0, %v455_v0  ;;  %326 = vmatprep.mubr.msk.bf16.mxu0 %vm456_vm1, %v455_v0  ;;  %v346_v2 = vld [vmem:[#allocation5] sm:$0xff]   ;;  %v457_v3 = vmov -1e+30   ;;  %vm148_vm2 = vcmask 130048  }
  0x1f   :  { %131 = vst.msk [vmem:[#allocation3 + $0x8] sm:$0xff] %vm127_vm0, %v455_v0  ;;  %132 = vst.msk [vmem:[#allocation4] sm:$0xff] %vm127_vm0, %v455_v0  ;;  %325 = vmatpush3.bf16.xpose.msra.mxu0 %v345_v1  ;;  %v510_v5 = vand.u32 127, %v105_v4  ;;  %v458_v9 = vmov -inf   ;;  %vm264_vm4 = vcmask 122880   ;;  %v459_v22 = vmov 0  }
  0x20   :  { %133 = vst.msk [vmem:[#allocation4 + $0x8] sm:$0xff] %vm127_vm0, %v455_v0  ;;  %128 = vst.msk [vmem:[#allocation2] sm:$0xff] %vm127_vm0, %v457_v3  ;;  %v170_v10 = vsel %vm148_vm2, -1e+30, %v458_v9  ;;  %344 = vset.pattern.permute.xlu0 %v459_v22  ;;  %343 = vset.pattern.permute.xlu1 %v459_v22  ;;  %v106_v32 = vshrl.u32 %v105_v4, 7  ;;  %s460_s28 = smov [#allocation10]  }
  0x21   :  { %129 = vst.msk [vmem:[#allocation2 + $0x8] sm:$0xff] %vm127_vm0, %v457_v3  ;;  %vm118_vm3 = vcmp.lt.s32.totalorder %v510_v5, 8  ;;  %s294_s29 = sshll.u32 %s460_s28, 4  ;;  %s295_s29 = int_to_ptr.vmem [resolvable:$true] %s294_s29 }
  0x22   :  { %vm144_vm5 = vcmp.eq.s32.totalorder %v106_v32, %v510_v5  ;;  %v107_v62 = vadd.s32 8, %v106_v32  ;;  %s403_s30 = scalar_lea.vmem %s295_s29, 16  ;;  %s407_s5 = scalar_lea.vmem %s295_s29, 32 }
  0x23   :  { %p404_p10 = scmp.ne.s32.totalorder %s295_s29, %s403_s30  ;;  %p408_p11 = scmp.lt.s32.totalorder %s295_s29, %s295_s29 }
  0x24   :  { %vm145_vm6 = vcmp.eq.s32.totalorder %v107_v62, %v510_v5  ;;  %p409_p12 = scmp.lt.s32.totalorder %s407_s5, %s403_s30 }
  0x25   :  { %v147_v1 = vsel %vm145_vm6, -1e+30, %v455_v0 }
  0x26   :  { %327 = vmatmul.mubr.bf16.vlgmr.msra.gmra.mxu0 %v346_v2  ;;  %v155_v52 = vld [vmem:[#allocation4] sm:$0xff]  ;;  %v152_v3 = vsel %vm148_vm2, %v147_v1, 0.0  ;;  %p410_p13 = por %p409_p12, %p408_p11 }
  0x27   :  { %v519_v23 = vld [vmem:[#allocation2] sm:$0xff] }
  0x28   :  { %v163_v26 = vld [vmem:[#allocation2 + $0x8] sm:$0xff]  ;;  %p411_p0 = pnand %p410_p13, %p404_p10 }
  0xe6   :  { %v95_v6 = vpop.f32.mrf.mxu0 }
  0xe7   :  { %v102_v7 = vmul.f32 2.65926, %v95_v6 }
  0xe8   :  { %v328_v8 = vpop.f32.mrf.mxu0 }
  0xe9   :  { %v121_v11 = vsel %vm118_vm3, %v102_v7, -1e+30 }
  0xea   :  { %v98_v12 = vpop.f32.mrf.mxu0  ;;  %v167_v13 = vsel %vm148_vm2, %v121_v11, -inf  ;;  %v146_v33 = vsel %vm144_vm5, %v121_v11, 0.0 }
  0xeb   :  { %168 = vmax.xlane.f32.xlu0 %v167_v13  ;;  %v212_v14 = vmax.f32 %v167_v13, %v170_v10  ;;  %v149_v34 = vsel %vm148_vm2, %v146_v33, 0.0 }
  0xec   :  { %v329_v15 = vpop.f32.mrf.mxu0 }
  0xed   :  { %v213_v16 = vrot.slane %v212_v14, 4 }
  0xef   :  { %171 = vmax.xlane.f32.xlu0 %v170_v10  ;;  %v214_v17 = vmax.f32 %v212_v14, %v213_v16 }
  0xf1   :  { %v215_v18 = vrot.slane %v214_v17, 2 }
  0xf3   :  { %v216_v19 = vmax.f32 %v214_v17, %v215_v18 }
  0xf5   :  { %v217_v20 = vrot.slane %v216_v19, 1 }
  0xf7   :  { %v515_v21 = vmax.f32 %v216_v19, %v217_v20 }
  0xf9   :  { %265 = vst.msk [vmem:[#allocation10] sm:$0x1] %vm264_vm4, %v515_v21 }
 0x174   :  { %v169_v24 = vpop.xlane.xlu0 %168 }
 0x175   :  { %v522_v25 = vmax.f32 %v519_v23, %v169_v24 }
 0x177   :  { %208 = vst.msk [vmem:[#allocation2] sm:$0xff] %vm127_vm0, %v522_v25  ;;  %v219_v29 = vsel %vm127_vm0, %v522_v25, -inf }
 0x178   :  { %v172_v27 = vpop.xlane.xlu0 %171 }
 0x179   :  { %v174_v28 = vmax.f32 %v163_v26, %v172_v27 }
 0x17b   :  { %209 = vst.msk [vmem:[#allocation2 + $0x8] sm:$0xff] %vm127_vm0, %v174_v28  ;;  %182 = vperm.xlu0 %344, %v174_v28   ;;  %v220_v30 = vsel %vm127_vm0, %v174_v28, -inf  ;;  %v192_v63 = vsub.f32 %v163_v26, %v174_v28 }
 0x17c   :  { %v221_v31 = vmax.f32 %v219_v29, %v220_v30 }
 0x17d   :  { %v195_v2 = vmul.f32 1.442695, %v192_v63 }
 0x17e   :  { %222 = vmax.xlane.f32.xlu1 %v221_v31 }
 0x18f   :  { %177 = vperm.xlu1 %343, %v522_v25  }
 0x19a   :  { %150 = vadd.xlane.f32.xlu0 %v149_v34 }
 0x1f6   :  { %v183_v35 = vpop.permute.xlu0 %182 }
 0x1f7   :  { %v186_v36 = vsub.f32 -1e+30, %v183_v35 }
 0x1f9   :  { %v189_v37 = vmul.f32 1.442695, %v186_v36 }
 0x1fb   :  { %347 = vpow2.f32 %v189_v37 }
 0x207   :  { %v223_v38 = vpop.xlane.xlu1 %222 }
 0x208   :  { %v533_v39 = vpop.eup %347  ;;  %v224_v40 = vrot.slane %v223_v38, 4 }
 0x209   :  { %v202_v41 = vsel %vm148_vm2, %v533_v39, 0.0 }
 0x20a   :  { %v225_v42 = vmax.f32 %v223_v38, %v224_v40  ;;  %203 = vadd.xlane.f32.xlu0 %v202_v41 }
 0x20b   :  { %v178_v43 = vpop.permute.xlu1 %177 }
 0x20c   :  { %v226_v44 = vrot.slane %v225_v42, 2  ;;  %v185_v45 = vsub.f32 %v121_v11, %v178_v43 }
 0x20e   :  { %v187_v46 = vmul.f32 1.442695, %v185_v45  ;;  %v227_v47 = vmax.f32 %v225_v42, %v226_v44 }
 0x210   :  { %349 = vpow2.f32 %v187_v46  ;;  %v228_v48 = vrot.slane %v227_v47, 1 }
 0x212   :  { %v229_v49 = vmax.f32 %v227_v47, %v228_v48 }
 0x214   :  { %330 = vpush %v229_v49 }
 0x21d   :  { %v537_v50 = vpop.eup %349 }
 0x21e   :  { %v199_v51 = vsel %vm148_vm2, %v537_v50, 0.0 }
 0x21f   :  { %200 = vadd.xlane.f32.xlu1 %v199_v51 }
 0x223   :  { %v151_v53 = vpop.xlane.xlu0 %150 }
 0x224   :  { %v157_v54 = vadd.f32 %v155_v52, %v151_v53 }
 0x226   :  { %160 = vst.msk [vmem:[#allocation4] sm:$0xff] %vm127_vm0, %v157_v54 }
 0x245   :  { %s331_s1 = spop %330 }
 0x246   :  { %v231_v55 = vstv %s331_s1 }
 0x247   :  { %v232_v56 = vsub.f32 %v522_v25, %v231_v55  ;;  %v233_v57 = vsub.f32 %v174_v28, %v231_v55 }
 0x249   :  { %v234_v58 = vmul.f32 1.442695, %v232_v56  ;;  %v236_v59 = vmul.f32 1.442695, %v233_v57 }
 0x24b   :  { %351 = vpow2.f32 %v234_v58 }
 0x24c   :  { %353 = vpow2.f32 %v236_v59 }
 0x24d   :  { %355 = vpow2.f32 %v195_v2 }
 0x258   :  { %v352_v60 = vpop.eup %351 }
 0x259   :  { %244 = vperm.xlu1 %343, %v352_v60   ;;  %v354_v61 = vpop.eup %353 }
 0x25d   :  { %249 = vperm.xlu1 %343, %v354_v61  }
 0x281   :  { %153 = vadd.xlane.f32.xlu1 %v152_v3 }
 0x282   :  { %414 = shalt.err (!%p411_p0)
}
 0x283   :  { %297 = dma.vmem_to_hbm [thread:$0]  %s295_s29, 16, %s571_s3, [#allocation7]   ;;  %v356_v0 = vpop.eup %355  ;;  %v191_v4 = vsub.f32 %v519_v23, %v522_v25  ;;  %v165_v5 = vld [vmem:[#allocation3 + $0x8] sm:$0xff]  ;;  %v164_v11 = vld [vmem:[#allocation3] sm:$0xff]  ;;  %v276_v16 = vld [vmem:[#allocation4] sm:$0xff]  ;;  %v238_v22 = vsub.f32 %v231_v55, %v515_v21 }
 0x284   :  { %v198_v6 = vmul.f32 %v356_v0, %v165_v5  ;;  %v278_v19 = vmul.f32 2.0, %v276_v16 }
 0x285   :  { %v193_v7 = vmul.f32 1.442695, %v191_v4  ;;  %v239_v23 = vmin.f32 %v238_v22, 80.0 }
 0x287   :  { %357 = vpow2.f32 %v193_v7  ;;  %v240_v27 = vmul.f32 1.442695, %v239_v23 }
 0x293   :  { %v204_v8 = vpop.xlane.xlu0 %203 }
 0x294   :  { %v206_v9 = vadd.f32 %v204_v8, %v198_v6  ;;  %v358_v10 = vpop.eup %357 }
 0x295   :  { %v197_v12 = vmul.f32 %v358_v10, %v164_v11 }
 0x296   :  { %211 = vst.msk [vmem:[#allocation3 + $0x8] sm:$0xff] %vm127_vm0, %v206_v9 }
 0x2a8   :  { %v201_v13 = vpop.xlane.xlu1 %200 }
 0x2a9   :  { %v205_v14 = vadd.f32 %v201_v13, %v197_v12 }
 0x2ab   :  { %210 = vst.msk [vmem:[#allocation3] sm:$0xff] %vm127_vm0, %v205_v14  ;;  %359 = vlog2.f32 %v205_v14 }
 0x2ac   :  { %361 = vpow2.f32 %v240_v27 }
 0x2b8   :  { %v360_v15 = vpop.eup %359 }
 0x2b9   :  { %v271_v17 = vmul.f32 0.6931472, %v360_v15  ;;  %v362_v37 = vpop.eup %361 }
 0x2bb   :  { %v274_v18 = vadd.f32 %v271_v17, %v522_v25 }
 0x2bd   :  { %v280_v20 = vsub.f32 %v274_v18, %v278_v19 }
 0x2bf   :  { %284 = vst.msk [vmem:[%s570_s2] sm:$0xff] %vm127_vm0, %v280_v20  ;;  %s461_s2 = smov [#allocation11]  }
 0x2c0   :  { %s304_s9 = sshll.u32 %s461_s2, 4  ;;  %s305_s9 = int_to_ptr.vmem [resolvable:$true] %s304_s9 }
 0x2c1   :  { %s423_s10 = scalar_lea.vmem %s305_s9, 16  ;;  %s427_s11 = scalar_lea.vmem %s305_s9, 32 }
 0x2c2   :  { %p424_p1 = scmp.ne.s32.totalorder %s305_s9, %s423_s10  ;;  %p428_p2 = scmp.lt.s32.totalorder %s305_s9, %s305_s9 }
 0x2c3   :  { %p429_p3 = scmp.lt.s32.totalorder %s427_s11, %s423_s10 }
 0x2c5   :  { %p430_p4 = por %p429_p3, %p428_p2 }
 0x2c7   :  { %p431_p5 = pnand %p430_p4, %p424_p1 }
 0x2d4   :  { %v245_v24 = vpop.permute.xlu1 %244 }
 0x2d5   :  { %v252_v26 = vmul.f32 %v537_v50, %v245_v24 }
 0x2d7   :  { %v254_v30 = vsel %vm148_vm2, %v252_v26, 0.0 }
 0x2d8   :  { %v250_v28 = vpop.permute.xlu1 %249 }
 0x2d9   :  { %v253_v29 = vmul.f32 %v533_v39, %v250_v28 }
 0x2db   :  { %v255_v25 = vsel %vm148_vm2, %v253_v29, 0.0 }
 0x2dc   :  { %v256_v31 = vadd.f32 %v255_v25, %v254_v30 }
 0x2de   :  { %v257_v32 = vrot.slane %v256_v31, 4 }
 0x2e0   :  { %v258_v33 = vadd.f32 %v257_v32, %v256_v31 }
 0x2e2   :  { %v259_v34 = vrot.slane %v258_v33, 2 }
 0x2e4   :  { %v260_v35 = vadd.f32 %v259_v34, %v258_v33 }
 0x2e6   :  { %v261_v36 = vrot.slane %v260_v35, 1 }
 0x2e8   :  { %v262_v21 = vadd.f32 %v261_v36, %v260_v35 }
 0x2ea   :  { %v263_v38 = vmul.f32 %v362_v37, %v262_v21 }
 0x2ec   :  { %266 = vst.msk [vmem:[#allocation11] sm:$0x1] %vm264_vm4, %v263_v38 }
 0x2ed   :  { %434 = shalt.err (!%p431_p5)
}
 0x2ee   :  { %307 = dma.vmem_to_hbm [thread:$0]  %s305_s9, 16, %s572_s4, [#allocation12]   ;;  %v156_v39 = vld [vmem:[#allocation4 + $0x8] sm:$0xff] }
 0x30a   :  { %v154_v40 = vpop.xlane.xlu1 %153 }
 0x30b   :  { %v158_v41 = vadd.f32 %v156_v39, %v154_v40 }
 0x30d   :  { %161 = vst.msk [vmem:[#allocation4 + $0x8] sm:$0xff] %vm127_vm0, %v158_v41 }
 0x30e   :  { %447 = dma.done.wait [#allocation7], 16  }
 0x30f   :  { %448 = vsyncadd [#allocation7], 4294967280 }
 0x310   :  { %449 = dma.done.wait [#allocation12], 16  }
 0x311   :  { %450 = vsyncadd [#allocation12], 4294967280 }
 0x312   :  { %316 = vsyncpa [#allocation6], 1 }
 0x313   :  { %317 = vsyncpa [#allocation9], 1 }
 0x314   :  { %318 = vsyncpa [#allocation7], 1 }
 0x315   :  { %319 = vsyncpa [#allocation12], 1 }

</bundles_post_ra>
